<compile_context>
chip_gen: v7x
topology: tpu7x:2x2x1
jax: 0.10.0
libtpu: 0.0.40
codegen_flags: <defaults>
</compile_context>

<pallas_src>
import math
from functools import partial

import jax
import jax.numpy as jnp
from jax import lax
from jax.experimental import pallas as pl
from jax.experimental.pallas import tpu as pltpu


# ----------------------------- VMEM budget (generation-aware) -----------------------------

def _vmem_limit_bytes():
    """~3/4 of physical VMEM: 96 MiB on v5e/v6e (128 MiB), 48 MiB on v7x (64 MiB)."""
    cap = None
    try:
        info = pltpu.get_tpu_info()
        cap = getattr(info, "vmem_capacity_bytes", None)
    except Exception:
        cap = None
    if not cap:
        cap = 64 * 1024 * 1024          # conservative fallback (safe on every generation)
    return min(int(cap * 3 // 4), 112 * 1024 * 1024)


# ----------------------------- Fused QKV projection kernel -----------------------------

def _qkv_kernel(x_ref, w_ref, b_ref, q_ref, k_ref, v_ref):
    # bf16 x bf16 -> fp32 accumulate on the MXU; bias add in fp32; store bf16.
    y = jnp.dot(x_ref[...], w_ref[...], preferred_element_type=jnp.float32)
    y = y + b_ref[...]
    hd = q_ref.shape[-1]
    q_ref[...] = y[:, 0 * hd:1 * hd].astype(q_ref.dtype)
    k_ref[...] = y[:, 1 * hd:2 * hd].astype(k_ref.dtype)
    v_ref[...] = y[:, 2 * hd:3 * hd].astype(v_ref.dtype)


def _pick_tile_m(M, K, hd, vmem_limit):
    """Largest row tile whose per-step blocks (+ fp32 intermediate) fit the VMEM budget."""
    budget = int(vmem_limit * 0.6)

    def est(tm):
        bf16, f32 = 2, 4
        x = tm * K * bf16
        outs = 3 * tm * hd * bf16
        w = K * 3 * hd * bf16
        b = 3 * hd * f32
        inter = tm * 3 * hd * f32          # fp32 accumulator before the down-cast
        return 2 * (x + outs) + 2 * w + b + inter

    for tm in (2048, 1024, 512, 256, 128):
        if M % tm == 0 and est(tm) <= budget:
            return tm
    return M  # TODO(synk): tiny / oddly-sized M -> single block (fine for test shapes)


def fused_qkv_projection(x2d, wqkv, bqkv, hd, *, vmem_limit):
    """q,k,v = split(x2d @ wqkv + bqkv).  x2d: [M,K] bf16, wqkv: [K,3*hd] bf16, bqkv: [1,3*hd] f32.
    Activations are read from HBM exactly once; weights stay resident across M tiles."""
    M, K = x2d.shape
    N = wqkv.shape[1]
    tm = _pick_tile_m(M, K, hd, vmem_limit)
    out_sd = jax.ShapeDtypeStruct((M, hd), jnp.bfloat16)
    return pl.pallas_call(
        _qkv_kernel,
        out_shape=(out_sd, out_sd, out_sd),
        grid=(M // tm,),
        in_specs=[
            pl.BlockSpec((tm, K), lambda i: (i, 0)),
            pl.BlockSpec((K, N), lambda i: (0, 0)),   # weights resident across M tiles
            pl.BlockSpec((1, N), lambda i: (0, 0)),
        ],
        out_specs=(
            pl.BlockSpec((tm, hd), lambda i: (i, 0)),
            pl.BlockSpec((tm, hd), lambda i: (i, 0)),
            pl.BlockSpec((tm, hd), lambda i: (i, 0)),
        ),
        compiler_params=pltpu.CompilerParams(
            dimension_semantics=("parallel",),
            vmem_limit_bytes=vmem_limit,
        ),
    )(x2d, wqkv, bqkv)


# ----------------------------- Fused attention kernel -----------------------------

def _attn_kernel(q_ref, k_ref, v_ref, amask_ref, ov_ref, ovm_ref,
                 ctx_ref, probs_ref, *, scale, hblk, head_dim):
    tq = q_ref.shape[1]
    S = k_ref.shape[1]
    D = head_dim

    # Additive key mask — broadcast ONCE (hoisted out of the unrolled head loop).
    amask_full = jnp.broadcast_to(amask_ref[0, 0], (tq, S))        # (tq, S) fp32

    q_all = q_ref[0]                                               # (tq, hblk*D) bf16
    k_all = k_ref[0]                                               # (S,  hblk*D) bf16
    v_all = v_ref[0]                                               # (S,  hblk*D) bf16

    ctx_parts = []
    for hh in range(hblk):                                         # static unroll (hblk small)
        sl = slice(hh * D, (hh + 1) * D)
        q = q_all[:, sl]                                           # (tq, D) bf16
        k = k_all[:, sl]                                           # (S,  D) bf16
        v = v_all[:, sl]                                           # (S,  D) bf16

        # scores = q @ k^T — transpose folded into the MXU contraction, bf16 operands.
        scores = lax.dot_general(
            q, k,
            dimension_numbers=(((1,), (1,)), ((), ())),
            preferred_element_type=jnp.float32,
        ) * scale
        scores = scores + amask_full

        # Numerically stable softmax; divide via EUP approx reciprocal + 1 Newton step.
        m = jnp.max(scores, axis=-1, keepdims=True)
        e = jnp.exp(scores - m)
        denom = jnp.sum(e, axis=-1, keepdims=True)
        r = pl.reciprocal(denom, approx=True)
        r = r * (2.0 - denom * r)
        probs = e * r

        # dropout(probs) is identity in eval mode; head_mask is None.
        # Override: single full-tile select (ov/ovm are already (tq, S) here).
        ov = ov_ref[0, hh]
        ovm = ovm_ref[0, hh]
        probs = jnp.where(ovm > 0.5, ov, probs)

        probs_ref[0, hh] = probs.astype(probs_ref.dtype)
        ctx_parts.append(jnp.dot(probs.astype(v.dtype), v,
                                 preferred_element_type=jnp.float32))

    # Single lane-dense (tq, hblk*D) store of the whole head-block context slab.
    ctx_ref[0] = jnp.concatenate(ctx_parts, axis=-1).astype(ctx_ref.dtype)


def _choose_hblk(H, D):
    """Smallest head block with a lane-dense (Hblk*D % 128 == 0) column footprint;
    otherwise take all heads so the block spans the full hidden dim."""
    for hb in range(1, H + 1):
        if H % hb == 0 and (hb * D) % 128 == 0:
            return hb
    # TODO(synk): for very large H with non-128-friendly D this fallback unrolls all heads.
    return H


def _choose_tq(S, Hblk, D, budget):
    """Largest query tile whose per-step blocks + in-kernel fp32 scratch fit the budget."""
    def est(tq):
        f32, bf16 = 4, 2
        blocks = (Hblk * tq * S * f32              # probs output block
                  + 2 * Hblk * tq * S * f32        # override + override-mask blocks
                  + tq * Hblk * D * f32            # ctx output block
                  + tq * Hblk * D * bf16           # q block
                  + 2 * S * Hblk * D * bf16)       # k, v blocks
        scratch = 4 * tq * S * f32                 # scores / exp / probs / mask live values
        return 2 * blocks + scratch                # x2 for double buffering

    if est(S) <= budget:
        return S
    for tq in (1024, 512, 256, 128, 64, 32, 16):
        if tq < S and S % tq == 0 and est(tq) <= budget:
            return tq
    return S


def attention_override_core(q3, k3, v3, amask, ov, ovm, *, num_heads, head_size,
                            vmem_limit, probs_dtype=jnp.float32):
    """q3,k3,v3: [B,S,Hd] bf16 ("mixed" layout — heads are contiguous D-column groups);
    amask: [B,1,1,S] f32; ov/ovm: [B,H,S,S] f32.
    Returns (context [B,S,Hd] f32, probs [B,H,S,S] probs_dtype)."""
    B, S, Hd = q3.shape
    H, D = num_heads, head_size
    Hblk = _choose_hblk(H, D)
    n_hb = H // Hblk
    tq = _choose_tq(S, Hblk, D, int(vmem_limit * 0.5))
    n_q = S // tq
    cols = Hblk * D
    scale = 1.0 / math.sqrt(head_size)
    kernel = partial(_attn_kernel, scale=scale, hblk=Hblk, head_dim=D)

    # Head blocks are addressed directly as column windows of the [B,S,Hd] projections —
    # no [B,H,S,D] transpose is ever materialized in HBM.
    q_spec = pl.BlockSpec((1, tq, cols), lambda b, h, qi: (b, qi, h))
    kv_spec = pl.BlockSpec((1, S, cols), lambda b, h, qi: (b, 0, h))   # resident across qi
    ov_spec = pl.BlockSpec((1, Hblk, tq, S), lambda b, h, qi: (b, h, qi, 0))

    ctx, probs = pl.pallas_call(
        kernel,
        out_shape=(
            jax.ShapeDtypeStruct((B, S, Hd), jnp.float32),
            jax.ShapeDtypeStruct((B, H, S, S), probs_dtype),
        ),
        grid=(B, n_hb, n_q),
        in_specs=[
            q_spec, kv_spec, kv_spec,
            pl.BlockSpec((1, 1, 1, S), lambda b, h, qi: (b, 0, 0, 0)),  # un-broadcast mask
            ov_spec, ov_spec,
        ],
        out_specs=(
            pl.BlockSpec((1, tq, cols), lambda b, h, qi: (b, qi, h)),   # lane-dense context
            ov_spec,
        ),
        compiler_params=pltpu.CompilerParams(
            dimension_semantics=("parallel", "parallel", "parallel"),
            vmem_limit_bytes=vmem_limit,
        ),
    )(q3, k3, v3, amask, ov, ovm)
    return ctx, probs


# ----------------------------- Module-equivalent forward -----------------------------

def prepare_params(params):
    """One-time parameter prep (hoisted out of the forward path): stacked bf16 QKV weight
    and stacked fp32 bias."""
    wqkv = jnp.concatenate([params["wq"], params["wk"], params["wv"]], axis=1)
    bqkv = jnp.concatenate([params["bq"], params["bk"], params["bv"]], axis=0)
    return {
        "wqkv": wqkv.astype(jnp.bfloat16),                # [Hd, 3*Hd] bf16 (MXU operand)
        "bqkv": bqkv.astype(jnp.float32).reshape(1, -1),  # [1, 3*Hd] f32 (fp32 bias add)
    }


def bert_attention_override(hidden_states, prepared, attn_override, attn_override_mask,
                            attention_mask=None, *, num_heads, probs_dtype=jnp.float32):
    """Mirrors BertAttentionOverride.forward (self-attention branch, head_mask=None)."""
    B, S, Hd = hidden_states.shape
    D = Hd // num_heads
    vmem_limit = _vmem_limit_bytes()

    # Fused QKV: one HBM read of the activations, one MXU pass over the stacked weights.
    x2 = hidden_states.reshape(B * S, Hd).astype(jnp.bfloat16)
    q2, k2, v2 = fused_qkv_projection(x2, prepared["wqkv"], prepared["bqkv"], Hd,
                                      vmem_limit=vmem_limit)

    # Free reshapes to [B, S, Hd]; per-head layout is consumed via BlockSpec column offsets.
    q3 = q2.reshape(B, S, Hd)
    k3 = k2.reshape(B, S, Hd)
    v3 = v2.reshape(B, S, Hd)

    if attention_mask is None:
        amask = jnp.zeros((B, 1, 1, S), jnp.float32)
    else:
        amask = jnp.broadcast_to(attention_mask.astype(jnp.float32), (B, 1, 1, S))

    ov = attn_override.astype(jnp.float32)
    ovm = attn_override_mask.astype(jnp.float32)
    oS = ovm.shape[-1]
    if oS != S:
        # Pad to (S, S) so the kernel applies one full-tile select (padded mask = 0 keeps
        # the computed probs). Typical usage has oS == S, so this costs nothing then.
        pad = ((0, 0), (0, 0), (0, S - oS), (0, S - oS))
        ov = jnp.pad(ov, pad)
        ovm = jnp.pad(ovm, pad)

    ctx, probs = attention_override_core(
        q3, k3, v3, amask, ov, ovm,
        num_heads=num_heads, head_size=D, vmem_limit=vmem_limit, probs_dtype=probs_dtype)
    # ctx is already [B, S, all_head_size] (kernel writes the permute+view layout directly).
    return ctx, probs


# ----------------------------- Pure-JAX reference (for verification) -----------------------------

def _reference(hidden_states, params, attn_override, attn_override_mask,
               attention_mask, num_heads):
    B, S, Hd = hidden_states.shape
    D = Hd // num_heads

    def proj(w, b):
        y = hidden_states @ w + b
        return y.reshape(B, S, num_heads, D).transpose(0, 2, 1, 3)

    q = proj(params["wq"], params["bq"])
    k = proj(params["wk"], params["bk"])
    v = proj(params["wv"], params["bv"])
    scores = jnp.einsum("bhqd,bhkd->bhqk", q, k) / math.sqrt(D)
    if attention_mask is not None:
        scores = scores + attention_mask
    probs = jax.nn.softmax(scores, axis=-1)
    oS = attn_override_mask.shape[-1]
    blk = jnp.where(attn_override_mask, attn_override, probs[:, :, :oS, :oS])
    probs = probs.at[:, :, :oS, :oS].set(blk)
    ctx = jnp.einsum("bhqk,bhkd->bhqd", probs, v)
    ctx = ctx.transpose(0, 2, 1, 3).reshape(B, S, Hd)
    return ctx, probs


# ----------------------------- Main -----------------------------

if __name__ == "__main__":
    B, S, HIDDEN, NUM_HEADS = 2, 8, 32, 4
    D = HIDDEN // NUM_HEADS
    OV_S = 8  # override block size (== seq here, as in canonical usage)

    key = jax.random.PRNGKey(0)
    ks = jax.random.split(key, 10)

    hidden_states = jax.random.normal(ks[0], (B, S, HIDDEN), jnp.float32)

    # Deterministic synthetic parameters (weights stored as [in, out]).
    params = {
        "wq": jax.random.normal(ks[1], (HIDDEN, HIDDEN), jnp.float32) * 0.05,
        "bq": jax.random.normal(ks[2], (HIDDEN,), jnp.float32) * 0.01,
        "wk": jax.random.normal(ks[3], (HIDDEN, HIDDEN), jnp.float32) * 0.05,
        "bk": jax.random.normal(ks[4], (HIDDEN,), jnp.float32) * 0.01,
        "wv": jax.random.normal(ks[5], (HIDDEN, HIDDEN), jnp.float32) * 0.05,
        "bv": jax.random.normal(ks[6], (HIDDEN,), jnp.float32) * 0.01,
    }
    prepared = prepare_params(params)   # hoisted out of the forward path (done once)

    attn_override = jax.random.uniform(ks[7], (B, NUM_HEADS, OV_S, OV_S), jnp.float32)
    attn_override_mask = jax.random.bernoulli(ks[8], 0.3, (B, NUM_HEADS, OV_S, OV_S))

    # Additive attention mask (BERT-style [B, 1, 1, S]: 0 for keep, -10000 for masked).
    keep = jax.random.bernoulli(ks[9], 0.9, (B, 1, 1, S))
    attention_mask = jnp.where(keep, 0.0, -10000.0).astype(jnp.float32)

    ctx, probs = bert_attention_override(
        hidden_states, prepared, attn_override, attn_override_mask,
        attention_mask=attention_mask, num_heads=NUM_HEADS,
    )
    ctx = jax.block_until_ready(ctx)
    probs = jax.block_until_ready(probs)

    ref_ctx, ref_probs = _reference(
        hidden_states, params, attn_override, attn_override_mask,
        attention_mask, NUM_HEADS,
    )
    # bf16 MXU operands -> looser tolerances than the pure-fp32 reference.
    assert ctx.shape == ref_ctx.shape and probs.shape == ref_probs.shape
    assert jnp.allclose(ctx, ref_ctx, atol=1e-2, rtol=1e-2)
    assert jnp.allclose(probs, ref_probs, atol=1e-2, rtol=1e-2)

    print("KERNEL_OK")
</pallas_src>

<mosaic_0001>
module attributes {stable_mosaic.version = 11 : i64} {
  func.func @_qkv_kernel(%arg0: i32, %arg1: memref<16x32xbf16, #tpu.memory_space<vmem>>, %arg2: memref<32x96xbf16, #tpu.memory_space<vmem>>, %arg3: memref<1x96xf32, #tpu.memory_space<vmem>>, %arg4: memref<16x32xbf16, #tpu.memory_space<vmem>>, %arg5: memref<16x32xbf16, #tpu.memory_space<vmem>>, %arg6: memref<16x32xbf16, #tpu.memory_space<vmem>>) attributes {dimension_semantics = [#tpu.dimension_semantics<parallel>], iteration_bounds = array<i64: 1>, scalar_prefetch = 0 : i64, scratch_operands = 0 : i64, tpu.core_type = #tpu.core_type<tc>, window_params = [{transform_indices = @transform_0, window_bounds = array<i64: 16, 32>}, {pipeline_mode = #tpu.pipeline_mode<synchronous>, transform_indices = @transform_1, window_bounds = array<i64: 32, 96>}, {pipeline_mode = #tpu.pipeline_mode<synchronous>, transform_indices = @transform_2, window_bounds = array<i64: 1, 96>}, {transform_indices = @transform_3, window_bounds = array<i64: 16, 32>}, {transform_indices = @transform_4, window_bounds = array<i64: 16, 32>}, {transform_indices = @transform_5, window_bounds = array<i64: 16, 32>}]} {
    %c0 = arith.constant 0 : index
    %c0_0 = arith.constant 0 : index
    %0 = vector.load %arg1[%c0, %c0_0] : memref<16x32xbf16, #tpu.memory_space<vmem>>, vector<16x32xbf16>
    %c0_1 = arith.constant 0 : index
    %c0_2 = arith.constant 0 : index
    %1 = vector.load %arg2[%c0_1, %c0_2] : memref<32x96xbf16, #tpu.memory_space<vmem>>, vector<32x96xbf16>
    %cst = arith.constant dense<0.000000e+00> : vector<16x96xf32>
    %2 = tpu.matmul %0, %1, %cst {dimension_numbers = #tpu.dot_dimension_numbers<[1], [0], [0], [1], [0, 0, 1, 1], [], []>} : vector<16x32xbf16>, vector<32x96xbf16>, vector<16x96xf32> -> vector<16x96xf32>
    %c0_3 = arith.constant 0 : index
    %c0_4 = arith.constant 0 : index
    %3 = vector.load %arg3[%c0_3, %c0_4] : memref<1x96xf32, #tpu.memory_space<vmem>>, vector<1x96xf32>
    %4 = vector.broadcast %3 : vector<1x96xf32> to vector<16x96xf32>
    %5 = arith.addf %2, %4 : vector<16x96xf32>
    %6 = vector.extract_strided_slice %5 {offsets = [0, 0], sizes = [16, 32], strides = [1, 1]} : vector<16x96xf32> to vector<16x32xf32>
    %7 = arith.truncf %6 : vector<16x32xf32> to vector<16x32xbf16>
    %c0_5 = arith.constant 0 : index
    %c0_6 = arith.constant 0 : index
    %8 = vector.load %arg4[%c0_5, %c0_6] : memref<16x32xbf16, #tpu.memory_space<vmem>>, vector<16x32xbf16>
    tpu.vector_store %arg4[%c0_5, %c0_6], %7 {strides = array<i32>} : memref<16x32xbf16, #tpu.memory_space<vmem>>, vector<16x32xbf16>,
    %9 = vector.extract_strided_slice %5 {offsets = [0, 32], sizes = [16, 32], strides = [1, 1]} : vector<16x96xf32> to vector<16x32xf32>
    %10 = arith.truncf %9 : vector<16x32xf32> to vector<16x32xbf16>
    %c0_7 = arith.constant 0 : index
    %c0_8 = arith.constant 0 : index
    %11 = vector.load %arg5[%c0_7, %c0_8] : memref<16x32xbf16, #tpu.memory_space<vmem>>, vector<16x32xbf16>
    tpu.vector_store %arg5[%c0_7, %c0_8], %10 {strides = array<i32>} : memref<16x32xbf16, #tpu.memory_space<vmem>>, vector<16x32xbf16>,
    %12 = vector.extract_strided_slice %5 {offsets = [0, 64], sizes = [16, 32], strides = [1, 1]} : vector<16x96xf32> to vector<16x32xf32>
    %13 = arith.truncf %12 : vector<16x32xf32> to vector<16x32xbf16>
    %c0_9 = arith.constant 0 : index
    %c0_10 = arith.constant 0 : index
    %14 = vector.load %arg6[%c0_9, %c0_10] : memref<16x32xbf16, #tpu.memory_space<vmem>>, vector<16x32xbf16>
    tpu.vector_store %arg6[%c0_9, %c0_10], %13 {strides = array<i32>} : memref<16x32xbf16, #tpu.memory_space<vmem>>, vector<16x32xbf16>,
    return
  }
  func.func @transform_0(%arg0: i32) -> (i32, i32) {
    %c0_i32 = arith.constant 0 : i32
    %c0_i32_0 = arith.constant 0 : i32
    return %arg0, %c0_i32 : i32, i32
  }
  func.func @transform_1(%arg0: i32) -> (i32, i32) {
    %c0_i32 = arith.constant 0 : i32
    %c0_i32_0 = arith.constant 0 : i32
    %c0_i32_1 = arith.constant 0 : i32
    return %c0_i32, %c0_i32_0 : i32, i32
  }
  func.func @transform_2(%arg0: i32) -> (i32, i32) {
    %c0_i32 = arith.constant 0 : i32
    %c0_i32_0 = arith.constant 0 : i32
    %c0_i32_1 = arith.constant 0 : i32
    return %c0_i32, %c0_i32_0 : i32, i32
  }
  func.func @transform_3(%arg0: i32) -> (i32, i32) {
    %c0_i32 = arith.constant 0 : i32
    %c0_i32_0 = arith.constant 0 : i32
    return %arg0, %c0_i32 : i32, i32
  }
  func.func @transform_4(%arg0: i32) -> (i32, i32) {
    %c0_i32 = arith.constant 0 : i32
    %c0_i32_0 = arith.constant 0 : i32
    return %arg0, %c0_i32 : i32, i32
  }
  func.func @transform_5(%arg0: i32) -> (i32, i32) {
    %c0_i32 = arith.constant 0 : i32
    %c0_i32_0 = arith.constant 0 : i32
    return %arg0, %c0_i32 : i32, i32
  }
}

</mosaic_0001>

<bundles_post_ra>
// kernel: tpu_custom_call.1
= control target key start
LH: loop header
LB: loop body
LE: loop exit
PB: predicated region body
PF: predicated region fallthrough
CT: control target
= control target key end

     0   :  { %11 = vsyncpa [#allocation3], 0  ;;  %s483_s0 = inlined_call_operand.hbm [shape: bf16[16,32], index: 0, kind: input, shape index: {}]   ;;  %s484_s1 = inlined_call_operand.hbm [shape: bf16[32,96], index: 1, kind: input, shape index: {}]   ;;  %s485_s2 = inlined_call_operand.vmem [shape: f32[1,96], index: 2, kind: input, shape index: {}]   ;;  %s486_s3 = inlined_call_operand.hbm [shape: bf16[16,32], index: 3, kind: output, shape index: {0}]   ;;  %s487_s4 = inlined_call_operand.hbm [shape: bf16[16,32], index: 4, kind: output, shape index: {1}]   ;;  %s488_s5 = inlined_call_operand.hbm [shape: bf16[16,32], index: 5, kind: output, shape index: {2}]  }
   0x1   :  { %12 = vsyncpa [#allocation6], 0 }
   0x2   :  { %13 = vsyncpa [#allocation4], 0 }
   0x3   :  { %14 = vsyncpa [#allocation9], 0  ;;  %s350_s18 = smov [#allocation2]   ;;  %s232_s22 = scalar_lea.hbm %s483_s0, 128 }
   0x4   :  { %s20_s19 = sshll.u32 %s350_s18, 4  ;;  %p233_p0 = scmp.ne.s32.totalorder %s483_s0, %s232_s22  ;;  %s21_s19 = int_to_ptr.vmem [resolvable:$true] %s20_s19 }
   0x5   :  { %p236_p1 = scmp.lt.u32.totalorder %s232_s22, %s483_s0 }
   0x7   :  { %p238_p2 = pnand %p236_p1, %p233_p0 }
   0x9   :  { %241 = shalt.err (!%p238_p2)
}
   0xa   :  { %s242_s27 = scalar_lea.vmem %s21_s19, 128  ;;  %p247_p4 = scmp.lt.s32.totalorder %s21_s19, %s21_s19 }
   0xb   :  { %p243_p3 = scmp.ne.s32.totalorder %s21_s19, %s242_s27  ;;  %p248_p5 = scmp.lt.s32.totalorder %s242_s27, %s242_s27 }
   0xd   :  { %p249_p6 = por %p248_p5, %p247_p4 }
   0xf   :  { %p250_p7 = pnand %p249_p6, %p243_p3 }
  0x11   :  { %253 = shalt.err (!%p250_p7)
}
  0x12   :  { %s351_s28 = smov 64   ;;  %s352_s29 = smov 4  }
  0x13   :  { %26 = dma.hbm_to_vmem [thread:$0]  %s483_s0, 128, %s21_s19, [#allocation3], %s351_s28, %s351_s28, %s352_s29  }
  0x14   :  { %s353_s7 = smov [#allocation5]   ;;  %s254_s11 = scalar_lea.hbm %s484_s1, 256 }
  0x15   :  { %s32_s8 = sshll.u32 %s353_s7, 4  ;;  %p255_p8 = scmp.ne.s32.totalorder %s484_s1, %s254_s11  ;;  %s33_s8 = int_to_ptr.vmem [resolvable:$true] %s32_s8 }
  0x16   :  { %p258_p9 = scmp.lt.u32.totalorder %s254_s11, %s484_s1 }
  0x18   :  { %p260_p10 = pnand %p258_p9, %p255_p8 }
  0x1a   :  { %263 = shalt.err (!%p260_p10)
}
  0x1b   :  { %s264_s16 = scalar_lea.vmem %s33_s8, 256  ;;  %p269_p12 = scmp.lt.s32.totalorder %s33_s8, %s33_s8 }
  0x1c   :  { %p265_p11 = scmp.ne.s32.totalorder %s33_s8, %s264_s16  ;;  %p270_p13 = scmp.lt.s32.totalorder %s264_s16, %s264_s16 }
  0x1e   :  { %p271_p0 = por %p270_p13, %p269_p12 }
  0x20   :  { %p272_p1 = pnand %p271_p0, %p265_p11 }
  0x22   :  { %275 = shalt.err (!%p272_p1)
}
  0x23   :  { %38 = dma.hbm_to_vmem [thread:$0]  %s484_s1, 256, %s33_s8, [#allocation6], %s351_s28, %s351_s28, %s352_s29  }
  0x24   :  { %342 = dma.done.wait [#allocation3], 128  }
  0x25   :  { %343 = vsyncadd [#allocation3], 4294967168 }
  0x26   :  { %344 = dma.done.wait [#allocation6], 256  }
  0x27   :  { %345 = vsyncadd [#allocation6], 4294967040  ;;  %v354_v0 = vmov 0.0   ;;  %vm355_vm0 = vmmov 0   ;;  %v229_v1 = vld [vmem:[#allocation5] sm:$0xff]   ;;  %v230_v2 = vld [vmem:[#allocation5 + $0x8] sm:$0xff]  }
  0x28   :  { %211 = vmatprep.subr.bf16.mxu0 %v354_v0  ;;  %215 = vmatprep.mubr.msk.bf16.mxu0 %vm355_vm0, %v354_v0  ;;  %v231_v3 = vld [vmem:[#allocation2] sm:$0xff]   ;;  %vm78_vm1 = vcmask 261120   ;;  %vm131_vm2 = vcmask 257024   ;;  %s356_s1 = smov [#allocation7]   ;;  %s357_s21 = smov 96  }
  0x29   :  { %212 = vmatpush3.bf16.msra.mxu0 %v229_v1  ;;  %v199_v4 = vld [vmem:[%s485_s2] ss:$0 sm:$0xff]  ;;  %s155_s20 = sshll.u32 %s356_s1, 4  ;;  %s156_s20 = int_to_ptr.vmem [resolvable:$true] %s155_s20 }
  0x2a   :  { %213 = vmatprep.subr.bf16.mxu0 %v354_v0  ;;  %s276_s2 = scalar_lea.vmem %s156_s20, 128  ;;  %p281_p3 = scmp.lt.s32.totalorder %s156_s20, %s156_s20 }
  0x2b   :  { %p277_p2 = scmp.ne.s32.totalorder %s156_s20, %s276_s2  ;;  %p282_p4 = scmp.lt.s32.totalorder %s276_s2, %s276_s2 }
  0x2d   :  { %214 = vmatpush3.bf16.msra.mxu0 %v230_v2  ;;  %p283_p5 = por %p282_p4, %p281_p3 }
  0x2f   :  { %p284_p6 = pnand %p283_p5, %p277_p2 }
  0x30   :  { %216 = vmatmul.mubr.msk.bf16.vlgmr.msra.gmra.mrb[0].mxu0 %vm78_vm1, %v231_v3 }
 0x103   :  { %v116_v5 = vpop.f32.mrb[0].mxu0 }
 0x104   :  { %v117_v6 = vadd.f32 %v199_v4, %v116_v5  ;;  %v217_v7 = vpop.f32.mrb[1].mxu0 }
 0x105   :  { %v119_v8 = vpop.f32.mrb[2].mxu0 }
 0x106   :  { %v206_v9 = vpack.c.bf16 %v117_v6, %v117_v6  ;;  %v120_v10 = vadd.f32 %v199_v4, %v119_v8  ;;  %v218_v11 = vpop.f32.mrb[3].mxu0 }
 0x108   :  { %v207_v12 = vpack.c.bf16 %v120_v10, %v120_v10  ;;  %142 = vrot.lane.b32.xlu1 %v206_v9, %s351_s28  ;;  %134 = vrot.lane.b32.xlu0 %v206_v9, %s357_s21  ;;  %132 = vst.msk [vmem:[#allocation7] sm:$0xf] %vm131_vm2, %v206_v9 }
 0x10a   :  { %133 = vst.msk [vmem:[#allocation7 + $0x4] sm:$0xf] %vm131_vm2, %v207_v12 }
 0x10b   :  { %287 = shalt.err (!%p284_p6)
}
 0x10c   :  { %s288_s24 = scalar_lea.hbm %s486_s3, 128 }
 0x10d   :  { %p289_p7 = scmp.ne.s32.totalorder %s486_s3, %s288_s24  ;;  %p292_p8 = scmp.lt.u32.totalorder %s288_s24, %s486_s3 }
 0x10f   :  { %p294_p9 = pnand %p292_p8, %p289_p7 }
 0x111   :  { %297 = shalt.err (!%p294_p9)
}
 0x112   :  { %161 = dma.vmem_to_hbm [thread:$0]  %s156_s20, 128, %s486_s3, [#allocation4], %s351_s28, %s351_s28, %s352_s29  }
 0x113   :  { %144 = vrot.lane.b32.xlu1 %v207_v12, %s351_s28  ;;  %136 = vrot.lane.b32.xlu0 %v207_v12, %s357_s21  ;;  %s358_s8 = smov [#allocation8]   ;;  %s359_s10 = smov [#allocation10]  }
 0x114   :  { %s167_s9 = sshll.u32 %s358_s8, 4  ;;  %s179_s11 = sshll.u32 %s359_s10, 4  ;;  %s168_s9 = int_to_ptr.vmem [resolvable:$true] %s167_s9  ;;  %s444_s11 = int_to_ptr.vmem [resolvable:$true] %s179_s11 }
 0x115   :  { %s298_s3 = scalar_lea.vmem %s168_s9, 128  ;;  %p303_p11 = scmp.lt.s32.totalorder %s168_s9, %s168_s9 }
 0x116   :  { %p299_p10 = scmp.ne.s32.totalorder %s168_s9, %s298_s3  ;;  %p304_p12 = scmp.lt.s32.totalorder %s298_s3, %s298_s3 }
 0x118   :  { %p305_p13 = por %p304_p12, %p303_p11 }
 0x11a   :  { %p306_p0 = pnand %p305_p13, %p299_p10 }
 0x17a   :  { %v143_v13 = vpop.permute.xlu1 %142  ;;  %v135_v14 = vpop.permute.xlu0 %134 }
 0x17b   :  { %148 = vst.msk [vmem:[#allocation10] sm:$0xf] %vm131_vm2, %v143_v13  ;;  %140 = vst.msk [vmem:[#allocation8] sm:$0xf] %vm131_vm2, %v135_v14 }
 0x185   :  { %v145_v15 = vpop.permute.xlu1 %144  ;;  %v137_v16 = vpop.permute.xlu0 %136 }
 0x186   :  { %149 = vst.msk [vmem:[#allocation10 + $0x4] sm:$0xf] %vm131_vm2, %v145_v15  ;;  %141 = vst.msk [vmem:[#allocation8 + $0x4] sm:$0xf] %vm131_vm2, %v137_v16 }
 0x187   :  { %309 = shalt.err (!%p306_p0)
}
 0x188   :  { %s310_s14 = scalar_lea.hbm %s487_s4, 128 }
 0x189   :  { %p311_p1 = scmp.ne.s32.totalorder %s487_s4, %s310_s14  ;;  %p314_p2 = scmp.lt.u32.totalorder %s310_s14, %s487_s4 }
 0x18b   :  { %p316_p3 = pnand %p314_p2, %p311_p1 }
 0x18d   :  { %319 = shalt.err (!%p316_p3)
}
 0x18e   :  { %173 = dma.vmem_to_hbm [thread:$0]  %s168_s9, 128, %s487_s4, [#allocation9], %s351_s28, %s351_s28, %s352_s29  }
 0x18f   :  { %s320_s1 = scalar_lea.vmem %s444_s11, 128  ;;  %p325_p5 = scmp.lt.s32.totalorder %s444_s11, %s444_s11 }
 0x190   :  { %p321_p4 = scmp.ne.s32.totalorder %s444_s11, %s320_s1  ;;  %p326_p6 = scmp.lt.s32.totalorder %s320_s1, %s320_s1 }
 0x192   :  { %p327_p7 = por %p326_p6, %p325_p5 }
 0x194   :  { %p328_p8 = pnand %p327_p7, %p321_p4 }
 0x196   :  { %331 = shalt.err (!%p328_p8)
}
 0x197   :  { %s332_s2 = scalar_lea.hbm %s488_s5, 128 }
 0x198   :  { %p333_p9 = scmp.ne.s32.totalorder %s488_s5, %s332_s2  ;;  %p336_p10 = scmp.lt.u32.totalorder %s332_s2, %s488_s5 }
 0x19a   :  { %p338_p11 = pnand %p336_p10, %p333_p9 }
 0x19c   :  { %341 = shalt.err (!%p338_p11)
}
 0x19d   :  { %185 = dma.vmem_to_hbm [thread:$0]  %s444_s11, 128, %s488_s5, [#allocation9], %s351_s28, %s351_s28, %s352_s29  }
 0x19e   :  { %346 = dma.done.wait [#allocation4], 128  }
 0x19f   :  { %347 = vsyncadd [#allocation4], 4294967168 }
 0x1a0   :  { %348 = dma.done.wait [#allocation9], 256  }
 0x1a1   :  { %349 = vsyncadd [#allocation9], 4294967040 }
 0x1a2   :  { %195 = vsyncpa [#allocation3], 1 }
 0x1a3   :  { %196 = vsyncpa [#allocation6], 1 }
 0x1a4   :  { %197 = vsyncpa [#allocation4], 1 }
 0x1a5   :  { %198 = vsyncpa [#allocation9], 1 }

</bundles_post_ra>
